<compile_context>
chip_gen: v7x
topology: tpu7x:2x2x1
jax: 0.10.0
libtpu: 0.0.40
codegen_flags: <defaults>
</compile_context>

<pallas_src>
import jax
import jax.numpy as jnp
from jax.experimental import pallas as pl
from jax.experimental.pallas import tpu as pltpu

_LANE = 128      # vreg lane width
_SUBLANE = 8     # f32 sublanes per vreg


def xornet_kernel(p_ref, x_ref, y_ref):
    """p_ref: SMEM f32[17] = [W1 (8, row-major), b1 (4), W2 (4), b2 (1)].
    x_ref:  VMEM (2, TILE_R, 128) — x^T with the batch tiled over
            (sublane, lane); the two input features on the leading axis.
    y_ref:  VMEM (TILE_R, 128)    — fully dense output slab.
    """
    x0 = x_ref[0]                               # (TILE_R, 128) — full vregs
    x1 = x_ref[1]

    # Fused Linear(2,4)+Sigmoid and Linear(4,1):
    #   h_j = sigmoid(W1[0,j]*x0 + W1[1,j]*x1 + b1[j]);  acc = sum_j W2[j]*h_j
    acc = jnp.zeros_like(x0)
    for j in range(4):                          # static unroll — VPU + EUP only
        h_j = jax.nn.sigmoid(p_ref[j] * x0 + p_ref[4 + j] * x1 + p_ref[8 + j])
        acc = acc + p_ref[12 + j] * h_j

    # Layer 2 bias + final Sigmoid.
    y_ref[...] = jax.nn.sigmoid(acc + p_ref[16]).astype(y_ref.dtype)


def xornet_forward(x, w1, b1, w2, b2, *, tile_rows=1024):
    """x: (B, 2) f32.  w1: (2, 4), b1: (4,), w2: (4, 1), b2: (1,).
    Returns (B, 1) f32 = sigmoid(sigmoid(x @ w1 + b1) @ w2 + b2)."""
    B = x.shape[0]

    # Batch laid out as (rows, 128); rows padded to a multiple of 8 so the
    # block shape satisfies the (8, 128) tiling constraint exactly.
    rows = _SUBLANE * pl.cdiv(pl.cdiv(B, _LANE), _SUBLANE)
    tile_rows = max(_SUBLANE, min(tile_rows, rows))
    tile_rows = _SUBLANE * (tile_rows // _SUBLANE)
    n_tiles = pl.cdiv(rows, tile_rows)
    R = n_tiles * tile_rows
    B_pad = R * _LANE

    # Batch onto (sublane, lane); pad with zeros (sigmoid of padding is finite
    # and gets sliced off below).
    xT = x.astype(jnp.float32).T                # (2, B)
    if B_pad != B:
        xT = jnp.pad(xT, ((0, 0), (0, B_pad - B)))
    x3 = xT.reshape(2, R, _LANE)                # (2, R, 128)

    # Pack every parameter into one f32[17] vector -> SMEM via scalar prefetch.
    params = jnp.concatenate([
        w1.reshape(-1), b1.reshape(-1), w2.reshape(-1), b2.reshape(-1)
    ]).astype(jnp.float32)                      # (17,)

    grid_spec = pltpu.PrefetchScalarGridSpec(
        num_scalar_prefetch=1,
        grid=(n_tiles,),
        in_specs=[
            # (feature, row-tile, lane): sublane dim % 8 == 0, lane dim == 128.
            pl.BlockSpec((2, tile_rows, _LANE), lambda i, p: (0, i, 0)),
        ],
        out_specs=pl.BlockSpec((tile_rows, _LANE), lambda i, p: (i, 0)),
    )

    # Advisory: memory-bound (~2 flops/byte), 5 sigmoids per batch row.
    cost = pl.CostEstimate(
        flops=25 * B_pad,
        transcendentals=5 * B_pad,
        bytes_accessed=12 * B_pad,
    )

    y = pl.pallas_call(
        xornet_kernel,
        out_shape=jax.ShapeDtypeStruct((R, _LANE), jnp.float32),
        grid_spec=grid_spec,
        compiler_params=pltpu.CompilerParams(
            dimension_semantics=("parallel",),   # v7x: shard tiles across 2 TCs
        ),
        cost_estimate=cost,
    )(params, x3)

    return y.reshape(B_pad)[:B].reshape(B, 1)    # (B, 1)


def init_params(key):
    """Deterministic init matching PyTorch nn.Linear default:
    U(-1/sqrt(fan_in), 1/sqrt(fan_in)) for both weight and bias.
    Weights are stored transposed vs PyTorch: (in_features, out_features)."""
    k1, k2, k3, k4 = jax.random.split(key, 4)
    bound1 = 1.0 / jnp.sqrt(2.0)   # fan_in = 2
    bound2 = 1.0 / jnp.sqrt(4.0)   # fan_in = 4
    w1 = jax.random.uniform(k1, (2, 4), jnp.float32, -bound1, bound1)
    b1 = jax.random.uniform(k2, (4,), jnp.float32, -bound1, bound1)
    w2 = jax.random.uniform(k3, (4, 1), jnp.float32, -bound2, bound2)
    b2 = jax.random.uniform(k4, (1,), jnp.float32, -bound2, bound2)
    return w1, b1, w2, b2


if __name__ == "__main__":
    key = jax.random.PRNGKey(0)
    w1, b1, w2, b2 = init_params(key)

    # The 4 canonical XOR inputs as the batch.
    x = jnp.array([[0.0, 0.0],
                   [0.0, 1.0],
                   [1.0, 0.0],
                   [1.0, 1.0]], dtype=jnp.float32)

    out = xornet_forward(x, w1, b1, w2, b2)
    out = jax.block_until_ready(out)

    # Pure-JAX reference check (same math, no Pallas).
    ref = jax.nn.sigmoid(jax.nn.sigmoid(x @ w1 + b1) @ w2 + b2)
    assert out.shape == (4, 1), out.shape
    assert jnp.allclose(out, ref, atol=1e-5), (out, ref)

    print("KERNEL_OK")
</pallas_src>

<mosaic_0001>
module attributes {stable_mosaic.version = 11 : i64} {
  func.func @xornet_kernel(%arg0: i32, %arg1: memref<17xf32, #tpu.memory_space<smem>>, %arg2: memref<2x8x128xf32, #tpu.memory_space<vmem>>, %arg3: memref<8x128xf32, #tpu.memory_space<vmem>>) attributes {dimension_semantics = [#tpu.dimension_semantics<parallel>], iteration_bounds = array<i64: 1>, scalar_prefetch = 1 : i64, scratch_operands = 0 : i64, tpu.core_type = #tpu.core_type<tc>, window_params = [{transform_indices = @transform_0, window_bounds = array<i64: 2, 8, 128>}, {transform_indices = @transform_1, window_bounds = array<i64: 8, 128>}]} {
    %c0 = arith.constant 0 : index
    %c0_0 = arith.constant 0 : index
    %c0_1 = arith.constant 0 : index
    %0 = vector.load %arg2[%c0, %c0_0, %c0_1] : memref<2x8x128xf32, #tpu.memory_space<vmem>>, vector<1x8x128xf32>
    %1 = vector.shape_cast %0 : vector<1x8x128xf32> to vector<8x128xf32>
    %c1 = arith.constant 1 : index
    %c0_2 = arith.constant 0 : index
    %c0_3 = arith.constant 0 : index
    %2 = vector.load %arg2[%c1, %c0_2, %c0_3] : memref<2x8x128xf32, #tpu.memory_space<vmem>>, vector<1x8x128xf32>
    %3 = vector.shape_cast %2 : vector<1x8x128xf32> to vector<8x128xf32>
    %cst = arith.constant 0.000000e+00 : f32
    %4 = vector.broadcast %cst : f32 to vector<8x128xf32>
    %c0_4 = arith.constant 0 : index
    %5 = memref.load %arg1[%c0_4] : memref<17xf32, #tpu.memory_space<smem>>
    %6 = vector.broadcast %5 : f32 to vector<8x128xf32>
    %7 = arith.mulf %6, %1 : vector<8x128xf32>
    %c4 = arith.constant 4 : index
    %8 = memref.load %arg1[%c4] : memref<17xf32, #tpu.memory_space<smem>>
    %9 = vector.broadcast %8 : f32 to vector<8x128xf32>
    %10 = arith.mulf %9, %3 : vector<8x128xf32>
    %11 = arith.addf %7, %10 : vector<8x128xf32>
    %c8 = arith.constant 8 : index
    %12 = memref.load %arg1[%c8] : memref<17xf32, #tpu.memory_space<smem>>
    %13 = vector.broadcast %12 : f32 to vector<8x128xf32>
    %14 = arith.addf %11, %13 : vector<8x128xf32>
    %15 = arith.negf %14 : vector<8x128xf32>
    %16 = math.exp %15 : vector<8x128xf32>
    %cst_5 = arith.constant 1.000000e+00 : f32
    %17 = vector.broadcast %cst_5 : f32 to vector<8x128xf32>
    %18 = arith.addf %17, %16 : vector<8x128xf32>
    %19 = arith.divf %17, %18 : vector<8x128xf32>
    %c12 = arith.constant 12 : index
    %20 = memref.load %arg1[%c12] : memref<17xf32, #tpu.memory_space<smem>>
    %21 = vector.broadcast %20 : f32 to vector<8x128xf32>
    %22 = arith.mulf %21, %19 : vector<8x128xf32>
    %23 = arith.addf %4, %22 : vector<8x128xf32>
    %c1_6 = arith.constant 1 : index
    %24 = memref.load %arg1[%c1_6] : memref<17xf32, #tpu.memory_space<smem>>
    %25 = vector.broadcast %24 : f32 to vector<8x128xf32>
    %26 = arith.mulf %25, %1 : vector<8x128xf32>
    %c5 = arith.constant 5 : index
    %27 = memref.load %arg1[%c5] : memref<17xf32, #tpu.memory_space<smem>>
    %28 = vector.broadcast %27 : f32 to vector<8x128xf32>
    %29 = arith.mulf %28, %3 : vector<8x128xf32>
    %30 = arith.addf %26, %29 : vector<8x128xf32>
    %c9 = arith.constant 9 : index
    %31 = memref.load %arg1[%c9] : memref<17xf32, #tpu.memory_space<smem>>
    %32 = vector.broadcast %31 : f32 to vector<8x128xf32>
    %33 = arith.addf %30, %32 : vector<8x128xf32>
    %34 = arith.negf %33 : vector<8x128xf32>
    %35 = math.exp %34 : vector<8x128xf32>
    %cst_7 = arith.constant 1.000000e+00 : f32
    %36 = vector.broadcast %cst_7 : f32 to vector<8x128xf32>
    %37 = arith.addf %36, %35 : vector<8x128xf32>
    %38 = arith.divf %36, %37 : vector<8x128xf32>
    %c13 = arith.constant 13 : index
    %39 = memref.load %arg1[%c13] : memref<17xf32, #tpu.memory_space<smem>>
    %40 = vector.broadcast %39 : f32 to vector<8x128xf32>
    %41 = arith.mulf %40, %38 : vector<8x128xf32>
    %42 = arith.addf %23, %41 : vector<8x128xf32>
    %c2 = arith.constant 2 : index
    %43 = memref.load %arg1[%c2] : memref<17xf32, #tpu.memory_space<smem>>
    %44 = vector.broadcast %43 : f32 to vector<8x128xf32>
    %45 = arith.mulf %44, %1 : vector<8x128xf32>
    %c6 = arith.constant 6 : index
    %46 = memref.load %arg1[%c6] : memref<17xf32, #tpu.memory_space<smem>>
    %47 = vector.broadcast %46 : f32 to vector<8x128xf32>
    %48 = arith.mulf %47, %3 : vector<8x128xf32>
    %49 = arith.addf %45, %48 : vector<8x128xf32>
    %c10 = arith.constant 10 : index
    %50 = memref.load %arg1[%c10] : memref<17xf32, #tpu.memory_space<smem>>
    %51 = vector.broadcast %50 : f32 to vector<8x128xf32>
    %52 = arith.addf %49, %51 : vector<8x128xf32>
    %53 = arith.negf %52 : vector<8x128xf32>
    %54 = math.exp %53 : vector<8x128xf32>
    %cst_8 = arith.constant 1.000000e+00 : f32
    %55 = vector.broadcast %cst_8 : f32 to vector<8x128xf32>
    %56 = arith.addf %55, %54 : vector<8x128xf32>
    %57 = arith.divf %55, %56 : vector<8x128xf32>
    %c14 = arith.constant 14 : index
    %58 = memref.load %arg1[%c14] : memref<17xf32, #tpu.memory_space<smem>>
    %59 = vector.broadcast %58 : f32 to vector<8x128xf32>
    %60 = arith.mulf %59, %57 : vector<8x128xf32>
    %61 = arith.addf %42, %60 : vector<8x128xf32>
    %c3 = arith.constant 3 : index
    %62 = memref.load %arg1[%c3] : memref<17xf32, #tpu.memory_space<smem>>
    %63 = vector.broadcast %62 : f32 to vector<8x128xf32>
    %64 = arith.mulf %63, %1 : vector<8x128xf32>
    %c7 = arith.constant 7 : index
    %65 = memref.load %arg1[%c7] : memref<17xf32, #tpu.memory_space<smem>>
    %66 = vector.broadcast %65 : f32 to vector<8x128xf32>
    %67 = arith.mulf %66, %3 : vector<8x128xf32>
    %68 = arith.addf %64, %67 : vector<8x128xf32>
    %c11 = arith.constant 11 : index
    %69 = memref.load %arg1[%c11] : memref<17xf32, #tpu.memory_space<smem>>
    %70 = vector.broadcast %69 : f32 to vector<8x128xf32>
    %71 = arith.addf %68, %70 : vector<8x128xf32>
    %72 = arith.negf %71 : vector<8x128xf32>
    %73 = math.exp %72 : vector<8x128xf32>
    %cst_9 = arith.constant 1.000000e+00 : f32
    %74 = vector.broadcast %cst_9 : f32 to vector<8x128xf32>
    %75 = arith.addf %74, %73 : vector<8x128xf32>
    %76 = arith.divf %74, %75 : vector<8x128xf32>
    %c15 = arith.constant 15 : index
    %77 = memref.load %arg1[%c15] : memref<17xf32, #tpu.memory_space<smem>>
    %78 = vector.broadcast %77 : f32 to vector<8x128xf32>
    %79 = arith.mulf %78, %76 : vector<8x128xf32>
    %80 = arith.addf %61, %79 : vector<8x128xf32>
    %c16 = arith.constant 16 : index
    %81 = memref.load %arg1[%c16] : memref<17xf32, #tpu.memory_space<smem>>
    %82 = vector.broadcast %81 : f32 to vector<8x128xf32>
    %83 = arith.addf %80, %82 : vector<8x128xf32>
    %84 = arith.negf %83 : vector<8x128xf32>
    %85 = math.exp %84 : vector<8x128xf32>
    %cst_10 = arith.constant 1.000000e+00 : f32
    %86 = vector.broadcast %cst_10 : f32 to vector<8x128xf32>
    %87 = arith.addf %86, %85 : vector<8x128xf32>
    %88 = arith.divf %86, %87 : vector<8x128xf32>
    %c0_11 = arith.constant 0 : index
    %c0_12 = arith.constant 0 : index
    %89 = vector.load %arg3[%c0_11, %c0_12] : memref<8x128xf32, #tpu.memory_space<vmem>>, vector<8x128xf32>
    tpu.vector_store %arg3[%c0_11, %c0_12], %88 {strides = array<i32>} : memref<8x128xf32, #tpu.memory_space<vmem>>, vector<8x128xf32>,
    return
  }
  func.func @transform_0(%arg0: i32, %arg1: memref<17xf32, #tpu.memory_space<smem>>) -> (i32, i32, i32) {
    %c0_i32 = arith.constant 0 : i32
    %c0_i32_0 = arith.constant 0 : i32
    %c0_i32_1 = arith.constant 0 : i32
    return %c0_i32, %arg0, %c0_i32_0 : i32, i32, i32
  }
  func.func @transform_1(%arg0: i32, %arg1: memref<17xf32, #tpu.memory_space<smem>>) -> (i32, i32) {
    %c0_i32 = arith.constant 0 : i32
    %c0_i32_0 = arith.constant 0 : i32
    return %arg0, %c0_i32 : i32, i32
  }
}

</mosaic_0001>

<bundles_post_ra>
// kernel: tpu_custom_call.1
= control target key start
LH: loop header
LB: loop body
LE: loop exit
PB: predicated region body
PF: predicated region fallthrough
CT: control target
= control target key end

     0   :  { %s301_s0 = inlined_call_operand.hbm [shape: f32[17], index: 0, kind: input, shape index: {}]   ;;  %s302_s1 = inlined_call_operand.hbm [shape: f32[2,8,128], index: 1, kind: input, shape index: {}]   ;;  %s303_s2 = inlined_call_operand.hbm [shape: f32[8,128], index: 2, kind: output, shape index: {}]  }
   0x1   :  { %s182_s11 = scalar_lea.hbm %s301_s0, 16 }
   0x2   :  { %p183_p0 = scmp.ne.s32.totalorder %s301_s0, %s182_s11  ;;  %p186_p1 = scmp.lt.u32.totalorder %s182_s11, %s301_s0 }
   0x4   :  { %p188_p2 = pnand %p186_p1, %p183_p0 }
   0x6   :  { %191 = shalt.err (!%p188_p2)  }
   0x7   :  { %s242_s16 = smov [#allocation3]  }
   0x8   :  { %8 = dma.hbm_to_smem %s301_s0, 16, %s242_s16, [#allocation2] }
   0x9   :  { %236 = dma.done.wait [#allocation2], 16 }
   0xa   :  { %237 = vsyncadd [#allocation2], 4294967280 }
   0xb   :  { %10 = sfence }
   0xc   :  { %11 = vsyncpa [#allocation5], 0 }
   0xd   :  { %12 = vsyncpa [#allocation6], 0  ;;  %s243_s19 = smov [#allocation4]   ;;  %s192_s23 = scalar_lea.hbm %s302_s1, 256 }
   0xe   :  { %s18_s20 = sshll.u32 %s243_s19, 4  ;;  %p193_p3 = scmp.ne.s32.totalorder %s302_s1, %s192_s23  ;;  %s19_s20 = int_to_ptr.vmem [resolvable:$true] %s18_s20 }
   0xf   :  { %p196_p4 = scmp.lt.u32.totalorder %s192_s23, %s302_s1 }
  0x11   :  { %p198_p5 = pnand %p196_p4, %p193_p3 }
  0x13   :  { %201 = shalt.err (!%p198_p5)
}
  0x14   :  { %s202_s0 = scalar_lea.vmem %s19_s20, 256  ;;  %p207_p7 = scmp.lt.s32.totalorder %s19_s20, %s19_s20 }
  0x15   :  { %p203_p6 = scmp.ne.s32.totalorder %s19_s20, %s202_s0  ;;  %p208_p8 = scmp.lt.s32.totalorder %s202_s0, %s202_s0 }
  0x17   :  { %p209_p9 = por %p208_p8, %p207_p7 }
  0x19   :  { %p210_p10 = pnand %p209_p9, %p203_p6 }
  0x1b   :  { %213 = shalt.err (!%p210_p10)
}
  0x1c   :  { %s244_s28 = smov 128   ;;  %s245_s29 = smov 8  }
  0x1d   :  { %24 = dma.hbm_to_vmem [thread:$0]  %s302_s1, 256, %s19_s20, [#allocation5], %s244_s28, %s244_s28, %s245_s29  }
  0x1e   :  { %238 = dma.done.wait [#allocation5], 256  }
  0x1f   :  { %239 = vsyncadd [#allocation5], 4294967040  ;;  %s31_s4 = sld [smem:[#allocation3]]  ;;  %s136_s5 = sld [smem:[#allocation3 + $0x4]]  ;;  %v28_v0 = vld [vmem:[#allocation4] sm:$0xff]  ;;  %v30_v1 = vld [vmem:[#allocation4 + $0x8] sm:$0xff] }
  0x20   :  { %s137_s6 = sld [smem:[#allocation3 + $0x8]]  ;;  %s140_s7 = sld [smem:[#allocation3 + $0x1]] }
  0x21   :  { %s141_s8 = sld [smem:[#allocation3 + $0x5]]  ;;  %s142_s9 = sld [smem:[#allocation3 + $0x9]] }
  0x22   :  { %s145_s10 = sld [smem:[#allocation3 + $0x2]]  ;;  %s146_s11 = sld [smem:[#allocation3 + $0x6]] }
  0x23   :  { %s286_s12 = sld [smem:[#allocation3 + $0xa]]  ;;  %s150_s13 = sld [smem:[#allocation3 + $0x3]] }
  0x24   :  { %s151_s14 = sld [smem:[#allocation3 + $0x7]]  ;;  %s152_s1 = sld [smem:[#allocation3 + $0xb]] }
  0x25   :  { %v32_v2 = vstv %s31_s4  ;;  %v35_v3 = vstv %s136_s5  ;;  %s139_s15 = sld [smem:[#allocation3 + $0xc]]  ;;  %s144_s16 = sld [smem:[#allocation3 + $0xd]] }
  0x26   :  { %v33_v4 = vmul.f32 %v32_v2, %v28_v0  ;;  %v36_v5 = vmul.f32 %v35_v3, %v30_v1  ;;  %v39_v6 = vstv %s137_s6  ;;  %v52_v7 = vstv %s140_s7  ;;  %s149_s17 = sld [smem:[#allocation3 + $0xe]]  ;;  %s154_s18 = sld [smem:[#allocation3 + $0xf]] }
  0x27   :  { %v55_v8 = vstv %s141_s8  ;;  %v53_v10 = vmul.f32 %v52_v7, %v28_v0  ;;  %v59_v12 = vstv %s142_s9  ;;  %s155_s19 = sld [smem:[#allocation3 + $0x10]]  ;;  %s246_s20 = smov [#allocation7]  }
  0x28   :  { %v37_v9 = vadd.f32 %v36_v5, %v33_v4  ;;  %v56_v11 = vmul.f32 %v55_v8, %v30_v1  ;;  %v72_v13 = vstv %s145_s10  ;;  %v75_v14 = vstv %s146_s11  ;;  %s127_s21 = sshll.u32 %s246_s20, 4  ;;  %s128_s21 = int_to_ptr.vmem [resolvable:$true] %s127_s21 }
  0x29   :  { %v73_v17 = vmul.f32 %v72_v13, %v28_v0  ;;  %v76_v18 = vmul.f32 %v75_v14, %v30_v1  ;;  %v79_v19 = vstv %s286_s12  ;;  %v92_v20 = vstv %s150_s13  ;;  %s214_s22 = scalar_lea.vmem %s128_s21, 128  ;;  %p219_p12 = scmp.lt.s32.totalorder %s128_s21, %s128_s21 }
  0x2a   :  { %v40_v15 = vadd.f32 %v39_v6, %v37_v9  ;;  %v57_v16 = vadd.f32 %v56_v11, %v53_v10  ;;  %v95_v21 = vstv %s151_s14  ;;  %v93_v25 = vmul.f32 %v92_v20, %v28_v0  ;;  %p215_p11 = scmp.ne.s32.totalorder %s128_s21, %s214_s22  ;;  %p220_p13 = scmp.lt.s32.totalorder %s214_s22, %s214_s22 }
  0x2b   :  { %v77_v24 = vadd.f32 %v76_v18, %v73_v17  ;;  %v96_v26 = vmul.f32 %v95_v21, %v30_v1  ;;  %v99_v29 = vstv %s152_s1  ;;  %v48_v42 = vstv %s139_s15 }
  0x2c   :  { %v138_v22 = vmul.f32 -1.442695, %v40_v15  ;;  %v60_v23 = vadd.f32 %v59_v12, %v57_v16  ;;  %v68_v44 = vstv %s144_s16  ;;  %v88_v47 = vstv %s149_s17  ;;  %p221_p0 = por %p220_p13, %p219_p12 }
  0x2d   :  { %v80_v28 = vadd.f32 %v79_v19, %v77_v24  ;;  %v97_v30 = vadd.f32 %v96_v26, %v93_v25  ;;  %v108_v52 = vstv %s154_s18  ;;  %v112_v56 = vstv %s155_s19 }
  0x2e   :  { %162 = vpow2.f32 %v138_v22  ;;  %v143_v27 = vmul.f32 -1.442695, %v60_v23  ;;  %p222_p1 = pnand %p221_p0, %p215_p11 }
  0x2f   :  { %v148_v31 = vmul.f32 -1.442695, %v80_v28  ;;  %v100_v32 = vadd.f32 %v99_v29, %v97_v30 }
  0x30   :  { %164 = vpow2.f32 %v143_v27 }
  0x31   :  { %166 = vpow2.f32 %v148_v31  ;;  %v153_v33 = vmul.f32 -1.442695, %v100_v32 }
  0x33   :  { %168 = vpow2.f32 %v153_v33 }
  0x38   :  { %v163_v34 = vpop.eup %162 }
  0x39   :  { %v44_v35 = vadd.f32 1.0, %v163_v34 }
  0x3a   :  { %v165_v36 = vpop.eup %164 }
  0x3b   :  { %170 = vrcp.f32 %v44_v35  ;;  %v64_v37 = vadd.f32 1.0, %v165_v36  ;;  %v167_v38 = vpop.eup %166 }
  0x3c   :  { %v84_v39 = vadd.f32 1.0, %v167_v38 }
  0x3d   :  { %172 = vrcp.f32 %v64_v37  ;;  %v169_v40 = vpop.eup %168 }
  0x3e   :  { %174 = vrcp.f32 %v84_v39  ;;  %v104_v41 = vadd.f32 1.0, %v169_v40 }
  0x40   :  { %176 = vrcp.f32 %v104_v41 }
  0x45   :  { %v171_v43 = vpop.eup %170 }
  0x46   :  { %v49_v45 = vmul.f32 %v171_v43, %v48_v42 }
  0x47   :  { %v173_v46 = vpop.eup %172 }
  0x48   :  { %v69_v48 = vmul.f32 %v173_v46, %v68_v44  ;;  %v175_v49 = vpop.eup %174 }
  0x49   :  { %v89_v51 = vmul.f32 %v175_v49, %v88_v47 }
  0x4a   :  { %v70_v50 = vadd.f32 %v69_v48, %v49_v45  ;;  %v177_v53 = vpop.eup %176 }
  0x4b   :  { %v109_v55 = vmul.f32 %v177_v53, %v108_v52 }
  0x4c   :  { %v90_v54 = vadd.f32 %v89_v51, %v70_v50 }
  0x4e   :  { %v110_v57 = vadd.f32 %v109_v55, %v90_v54 }
  0x50   :  { %v113_v58 = vadd.f32 %v112_v56, %v110_v57 }
  0x52   :  { %v156_v59 = vmul.f32 -1.442695, %v113_v58 }
  0x54   :  { %178 = vpow2.f32 %v156_v59 }
  0x5e   :  { %v179_v60 = vpop.eup %178 }
  0x5f   :  { %v117_v61 = vadd.f32 1.0, %v179_v60 }
  0x61   :  { %180 = vrcp.f32 %v117_v61 }
  0x6b   :  { %v181_v62 = vpop.eup %180 }
  0x6c   :  { %120 = vst [vmem:[#allocation7] sm:$0xff] %v181_v62 }
  0x6d   :  { %225 = shalt.err (!%p222_p1)
}
  0x6e   :  { %s226_s25 = scalar_lea.hbm %s303_s2, 128 }
  0x6f   :  { %p227_p2 = scmp.ne.s32.totalorder %s303_s2, %s226_s25  ;;  %p230_p3 = scmp.lt.u32.totalorder %s226_s25, %s303_s2 }
  0x71   :  { %p232_p4 = pnand %p230_p3, %p227_p2 }
  0x73   :  { %235 = shalt.err (!%p232_p4)
}
  0x74   :  { %130 = dma.vmem_to_hbm [thread:$0]  %s128_s21, 128, %s303_s2, [#allocation6]  }
  0x75   :  { %240 = dma.done.wait [#allocation6], 128  }
  0x76   :  { %241 = vsyncadd [#allocation6], 4294967168 }
  0x77   :  { %134 = vsyncpa [#allocation5], 1 }
  0x78   :  { %135 = vsyncpa [#allocation6], 1 }

</bundles_post_ra>
